<compile_context>
chip_gen: v6e
topology: v6e:2x2x1
jax: 0.10.0
libtpu: 0.0.40
codegen_flags: <defaults>
</compile_context>

<pallas_src>
import jax
import jax.numpy as jnp
from jax.experimental import pallas as pl
from jax.experimental.pallas import tpu as pltpu

STATE_SIZE = 16     # forced by x.view(-1, 16) in the PyTorch forward
ACTION_SIZE = 4
_PACK_CANDIDATES = (32, 16, 8, 4, 2, 1)   # 32 * ACTION_SIZE == 128 output lanes


def _packed_linear_kernel(x_ref, w_ref, b_ref, o_ref):
    # x_ref: (tb, pack*16)  w_ref: (pack*16, pack*4)  b_ref: (1, pack*4)
    # o_ref: (tb, pack*4)
    y = jnp.dot(x_ref[...], w_ref[...], preferred_element_type=jnp.float32)
    o_ref[...] = (y + b_ref[...]).astype(o_ref.dtype)


def dummy_model_forward(x, weight, bias, *, target_x_tile_bytes=4 << 20):
    """Equivalent of DummyModel.forward: x.view(-1, 16) @ W.T + b.

    x      : any shape whose element count is divisible by 16
    weight : (ACTION_SIZE, STATE_SIZE)  (PyTorch nn.Linear layout)
    bias   : (ACTION_SIZE,)
    """
    x2d = x.reshape(-1, STATE_SIZE)           # view(-1, 16): free reshape
    B = x2d.shape[0]

    # Largest pack factor dividing B -> no pad / slice copy of x is ever needed.
    pack = next(p for p in _PACK_CANDIDATES if B % p == 0)
    Bp = B // pack
    K = pack * STATE_SIZE                     # packed input lane width (<= 512)
    N = pack * ACTION_SIZE                    # packed output lane width (<= 128)

    # Free contiguous reshape: packed row p holds logical rows p*pack .. p*pack+pack-1.
    x_packed = x2d.reshape(Bp, K)

    # Block-diagonal weight: W_blk[r*16+k, r'*4+n] = (r == r') * W.T[k, n].
    w_t = weight.T                            # (16, 4); nn.Linear stores (out, in)
    eye = jnp.eye(pack, dtype=w_t.dtype)
    w_block = jnp.einsum("rp,kn->rkpn", eye, w_t).reshape(K, N)
    b_block = jnp.tile(bias, pack).reshape(1, N)

    # Batch tile: ~target_x_tile_bytes of x per grid step (multiple of 8 rows),
    # or a single full-extent block when the whole batch already fits.
    itemsize = jnp.dtype(x_packed.dtype).itemsize
    tb = max(8, (target_x_tile_bytes // (K * itemsize)) // 8 * 8)
    if Bp <= tb:
        tb = Bp                               # block == full array dim -> always legal
    grid = (pl.cdiv(Bp, tb),)                 # ragged last tile handled by Pallas

    out_packed = pl.pallas_call(
        _packed_linear_kernel,
        out_shape=jax.ShapeDtypeStruct((Bp, N), x_packed.dtype),
        grid_spec=pltpu.PrefetchScalarGridSpec(
            num_scalar_prefetch=0,
            grid=grid,
            in_specs=[
                # activations: one batch tile per step (double-buffer pipelined)
                pl.BlockSpec((tb, K), lambda i: (i, 0)),
                # weight: same block every step -> stays resident in VMEM
                pl.BlockSpec((K, N), lambda i: (0, 0)),
                # bias: same block every step -> stays resident in VMEM
                pl.BlockSpec((1, N), lambda i: (0, 0)),
            ],
            out_specs=pl.BlockSpec((tb, N), lambda i: (i, 0)),
        ),
        compiler_params=pltpu.CompilerParams(
            dimension_semantics=("parallel",)),   # megacore split on v7x
    )(x_packed, w_block, b_block)

    return out_packed.reshape(B, ACTION_SIZE)     # free unpack back to (B, 4)


def init_params(key, state_size, action_size):
    # Deterministic init mimicking nn.Linear default: U(-1/sqrt(fan_in), 1/sqrt(fan_in))
    kw, kb = jax.random.split(key)
    bound = 1.0 / jnp.sqrt(jnp.float32(state_size))
    weight = jax.random.uniform(kw, (action_size, state_size), jnp.float32,
                                minval=-bound, maxval=bound)
    bias = jax.random.uniform(kb, (action_size,), jnp.float32,
                              minval=-bound, maxval=bound)
    return weight, bias


if __name__ == "__main__":
    key = jax.random.PRNGKey(0)
    kx, kp, kx2, kx3 = jax.random.split(key, 4)

    weight, bias = init_params(kp, STATE_SIZE, ACTION_SIZE)

    # 1) Small input consistent with view(-1, 16): (2, 4, 16, 16) -> 128 rows
    #    -> pack=32, 4 packed rows, single (4, 512)x(512, 128) block.
    x = jax.random.normal(kx, (2, 4, 16, 16), dtype=jnp.float32)
    out = jax.block_until_ready(dummy_model_forward(x, weight, bias))
    ref = x.reshape(-1, STATE_SIZE) @ weight.T + bias
    assert out.shape == ref.shape
    assert jnp.allclose(out, ref, atol=1e-5, rtol=1e-5)

    # 2) Multi-step pipelined grid + ragged last tile: 1000 rows -> pack=8,
    #    125 packed rows, 32-row tiles -> grid of 4 with a partial last block.
    x_med = jax.random.normal(kx2, (1000, 16), dtype=jnp.float32)
    out_med = jax.block_until_ready(
        dummy_model_forward(x_med, weight, bias, target_x_tile_bytes=16 * 1024))
    ref_med = x_med.reshape(-1, STATE_SIZE) @ weight.T + bias
    assert out_med.shape == ref_med.shape
    assert jnp.allclose(out_med, ref_med, atol=1e-5, rtol=1e-5)

    # 3) Tiny batch not divisible by 32: (2, 4, 4) -> 2 rows -> pack=2.
    x_small = jax.random.normal(kx3, (2, 4, 4), dtype=jnp.float32)
    out_small = jax.block_until_ready(dummy_model_forward(x_small, weight, bias))
    ref_small = x_small.reshape(-1, STATE_SIZE) @ weight.T + bias
    assert out_small.shape == (2, ACTION_SIZE)
    assert jnp.allclose(out_small, ref_small, atol=1e-5, rtol=1e-5)

    print("KERNEL_OK")
</pallas_src>

<mosaic_0001>
module attributes {stable_mosaic.version = 11 : i64} {
  func.func @_packed_linear_kernel(%arg0: i32, %arg1: memref<4x512xf32, #tpu.memory_space<vmem>>, %arg2: memref<512x128xf32, #tpu.memory_space<vmem>>, %arg3: memref<1x128xf32, #tpu.memory_space<vmem>>, %arg4: memref<4x128xf32, #tpu.memory_space<vmem>>) attributes {dimension_semantics = [#tpu.dimension_semantics<parallel>], iteration_bounds = array<i64: 1>, scalar_prefetch = 0 : i64, scratch_operands = 0 : i64, tpu.core_type = #tpu.core_type<tc>, window_params = [{transform_indices = @transform_0, window_bounds = array<i64: 4, 512>}, {pipeline_mode = #tpu.pipeline_mode<synchronous>, transform_indices = @transform_1, window_bounds = array<i64: 512, 128>}, {pipeline_mode = #tpu.pipeline_mode<synchronous>, transform_indices = @transform_2, window_bounds = array<i64: 1, 128>}, {transform_indices = @transform_3, window_bounds = array<i64: 4, 128>}]} {
    %c0 = arith.constant 0 : index
    %c0_0 = arith.constant 0 : index
    %0 = vector.load %arg1[%c0, %c0_0] : memref<4x512xf32, #tpu.memory_space<vmem>>, vector<4x512xf32>
    %c0_1 = arith.constant 0 : index
    %c0_2 = arith.constant 0 : index
    %1 = vector.load %arg2[%c0_1, %c0_2] : memref<512x128xf32, #tpu.memory_space<vmem>>, vector<512x128xf32>
    %cst = arith.constant dense<0.000000e+00> : vector<4x128xf32>
    %2 = tpu.matmul %0, %1, %cst {dimension_numbers = #tpu.dot_dimension_numbers<[1], [0], [0], [1], [0, 0, 1, 1], [], []>} : vector<4x512xf32>, vector<512x128xf32>, vector<4x128xf32> -> vector<4x128xf32>
    %c0_3 = arith.constant 0 : index
    %c0_4 = arith.constant 0 : index
    %3 = vector.load %arg3[%c0_3, %c0_4] : memref<1x128xf32, #tpu.memory_space<vmem>>, vector<1x128xf32>
    %4 = vector.broadcast %3 : vector<1x128xf32> to vector<4x128xf32>
    %5 = arith.addf %2, %4 : vector<4x128xf32>
    %c0_5 = arith.constant 0 : index
    %c0_6 = arith.constant 0 : index
    %6 = vector.load %arg4[%c0_5, %c0_6] : memref<4x128xf32, #tpu.memory_space<vmem>>, vector<4x128xf32>
    tpu.vector_store %arg4[%c0_5, %c0_6], %5 {strides = array<i32>} : memref<4x128xf32, #tpu.memory_space<vmem>>, vector<4x128xf32>,
    return
  }
  func.func @transform_0(%arg0: i32) -> (i32, i32) {
    %c0_i32 = arith.constant 0 : i32
    %c0_i32_0 = arith.constant 0 : i32
    return %arg0, %c0_i32 : i32, i32
  }
  func.func @transform_1(%arg0: i32) -> (i32, i32) {
    %c0_i32 = arith.constant 0 : i32
    %c0_i32_0 = arith.constant 0 : i32
    %c0_i32_1 = arith.constant 0 : i32
    return %c0_i32, %c0_i32_0 : i32, i32
  }
  func.func @transform_2(%arg0: i32) -> (i32, i32) {
    %c0_i32 = arith.constant 0 : i32
    %c0_i32_0 = arith.constant 0 : i32
    %c0_i32_1 = arith.constant 0 : i32
    return %c0_i32, %c0_i32_0 : i32, i32
  }
  func.func @transform_3(%arg0: i32) -> (i32, i32) {
    %c0_i32 = arith.constant 0 : i32
    %c0_i32_0 = arith.constant 0 : i32
    return %arg0, %c0_i32 : i32, i32
  }
}

</mosaic_0001>

<bundles_post_ra>
// kernel: tpu_custom_call.1
= control target key start
LH: loop header
LB: loop body
LE: loop exit
PB: predicated region body
PF: predicated region fallthrough
CT: control target
= control target key end

     0   :  { %8 = vsyncpa [#allocation3], 0  ;;  %s458_s0 = inlined_call_operand.hbm [shape: f32[4,512], index: 0, kind: input, shape index: {}]   ;;  %s459_s1 = inlined_call_operand.hbm [shape: f32[512,128], index: 1, kind: input, shape index: {}]   ;;  %s460_s2 = inlined_call_operand.vmem [shape: f32[1,128], index: 2, kind: input, shape index: {}]   ;;  %s461_s3 = inlined_call_operand.hbm [shape: f32[4,128], index: 3, kind: output, shape index: {}]  }
   0x1   :  { %9 = vsyncpa [#allocation6], 0 }
   0x2   :  { %10 = vsyncpa [#allocation4], 0  ;;  %s421_s12 = smov [#allocation2]   ;;  %s422_s14 = smov [#allocation5]  }
   0x3   :  { %s17_s13 = sshll.u32 %s421_s12, 4  ;;  %s26_s15 = sshll.u32 %s422_s14, 4  ;;  %s18_s13 = int_to_ptr.vmem [resolvable:$true] %s17_s13  ;;  %s27_s15 = int_to_ptr.vmem [resolvable:$true] %s26_s15 }
   0x4   :  { %s363_s16 = scalar_lea.vmem %s18_s13, 256  ;;  %p368_p1 = scmp.lt.s32.totalorder %s18_s13, %s18_s13 }
   0x5   :  { %p364_p0 = scmp.ne.s32.totalorder %s18_s13, %s363_s16  ;;  %p369_p2 = scmp.lt.s32.totalorder %s363_s16, %s363_s16 }
   0x7   :  { %p370_p3 = por %p369_p2, %p368_p1 }
   0x9   :  { %p371_p4 = pnand %p370_p3, %p364_p0 }
   0xb   :  { %374 = shalt.err (!%p371_p4)
}
   0xc   :  { %20 = dma.hbm_to_vmem [thread:$0]  %s458_s0, 256, %s18_s13, [#allocation3]  }
   0xd   :  { %s383_s19 = scalar_lea.vmem %s27_s15, 8192  ;;  %p388_p6 = scmp.lt.s32.totalorder %s27_s15, %s27_s15 }
   0xe   :  { %p384_p5 = scmp.ne.s32.totalorder %s27_s15, %s383_s19  ;;  %p389_p7 = scmp.lt.s32.totalorder %s383_s19, %s383_s19 }
  0x10   :  { %p390_p8 = por %p389_p7, %p388_p6 }
  0x12   :  { %p391_p9 = pnand %p390_p8, %p384_p5 }
  0x14   :  { %394 = shalt.err (!%p391_p9)
}
  0x15   :  { %s423_s20 = smov 128   ;;  %s424_s21 = smov 8  }
  0x16   :  { %32 = dma.hbm_to_vmem [thread:$0]  %s459_s1, 8192, %s27_s15, [#allocation6], %s423_s20, %s423_s20, %s424_s21  }
  0x17   :  { %415 = dma.done.wait [#allocation3], 256  }
  0x18   :  { %416 = vsyncadd [#allocation3], 4294967040 }
  0x19   :  { %417 = dma.done.wait [#allocation6], 8192  }
  0x1a   :  { %418 = vsyncadd [#allocation6], 4294959104  ;;  %v74_v0 = vld [vmem:[#allocation5 + $0xf8] sm:$0xff]  ;;  %v73_v4 = vld [vmem:[#allocation5 + $0xf0] sm:$0xff]  ;;  %s425_s24 = smov [#allocation7]  }
  0x1b   :  { %v106_v1 = vld [vmem:[#allocation5 + $0x1f8] sm:$0xff]  ;;  %278 = vmatprep.subr.mxu0 %v74_v0  ;;  %v105_v5 = vld [vmem:[#allocation5 + $0x1f0] sm:$0xff]  ;;  %v72_v8 = vld [vmem:[#allocation5 + $0xe8] sm:$0xff]  ;;  %s267_s25 = sshll.u32 %s425_s24, 4  ;;  %s268_s25 = int_to_ptr.vmem [resolvable:$true] %s267_s25 }
  0x1c   :  { %v58_v2 = vld [vmem:[#allocation5 + $0x78] sm:$0xff]  ;;  %313 = vmatprep.subr.mxu1 %v106_v1  ;;  %v57_v6 = vld [vmem:[#allocation5 + $0x70] sm:$0xff]  ;;  %v104_v9 = vld [vmem:[#allocation5 + $0x1e8] sm:$0xff]  ;;  %s395_s26 = scalar_lea.vmem %s268_s25, 64  ;;  %p400_p11 = scmp.lt.s32.totalorder %s268_s25, %s268_s25 }
  0x1d   :  { %v90_v3 = vld [vmem:[#allocation5 + $0x178] sm:$0xff]  ;;  %279 = vmatpush3.msra.mxu0 %v58_v2  ;;  %v89_v7 = vld [vmem:[#allocation5 + $0x170] sm:$0xff]  ;;  %v56_v10 = vld [vmem:[#allocation5 + $0x68] sm:$0xff]  ;;  %p396_p10 = scmp.ne.s32.totalorder %s268_s25, %s395_s26  ;;  %p401_p12 = scmp.lt.s32.totalorder %s395_s26, %s395_s26 }
  0x1e   :  { %314 = vmatpush3.msra.mxu1 %v90_v3  ;;  %280 = vmatprep.subr.mxu0 %v73_v4  ;;  %v88_v11 = vld [vmem:[#allocation5 + $0x168] sm:$0xff]  ;;  %v71_v12 = vld [vmem:[#allocation5 + $0xe0] sm:$0xff]  ;;  %v70_v16 = vld [vmem:[#allocation5 + $0xd8] sm:$0xff] }
  0x1f   :  { %315 = vmatprep.subr.mxu1 %v105_v5  ;;  %281 = vmatpush3.msra.mxu0 %v57_v6  ;;  %v103_v13 = vld [vmem:[#allocation5 + $0x1e0] sm:$0xff]  ;;  %v102_v17 = vld [vmem:[#allocation5 + $0x1d8] sm:$0xff]  ;;  %v69_v20 = vld [vmem:[#allocation5 + $0xd0] sm:$0xff]  ;;  %p402_p13 = por %p401_p12, %p400_p11 }
  0x20   :  { %316 = vmatpush3.msra.mxu1 %v89_v7  ;;  %282 = vmatprep.subr.mxu0 %v72_v8  ;;  %v55_v14 = vld [vmem:[#allocation5 + $0x60] sm:$0xff]  ;;  %v54_v18 = vld [vmem:[#allocation5 + $0x58] sm:$0xff]  ;;  %v101_v21 = vld [vmem:[#allocation5 + $0x1d0] sm:$0xff] }
  0x21   :  { %317 = vmatprep.subr.mxu1 %v104_v9  ;;  %v87_v15 = vld [vmem:[#allocation5 + $0x160] sm:$0xff]  ;;  %283 = vmatpush3.msra.mxu0 %v56_v10  ;;  %v86_v19 = vld [vmem:[#allocation5 + $0x158] sm:$0xff]  ;;  %v53_v22 = vld [vmem:[#allocation5 + $0x50] sm:$0xff]  ;;  %p403_p0 = pnand %p402_p13, %p396_p10 }
  0x22   :  { %318 = vmatpush3.msra.mxu1 %v88_v11  ;;  %284 = vmatprep.subr.mxu0 %v71_v12  ;;  %v85_v23 = vld [vmem:[#allocation5 + $0x150] sm:$0xff]  ;;  %v68_v24 = vld [vmem:[#allocation5 + $0xc8] sm:$0xff]  ;;  %v67_v28 = vld [vmem:[#allocation5 + $0xc0] sm:$0xff] }
  0x23   :  { %319 = vmatprep.subr.mxu1 %v103_v13  ;;  %285 = vmatpush3.msra.mxu0 %v55_v14  ;;  %v100_v25 = vld [vmem:[#allocation5 + $0x1c8] sm:$0xff]  ;;  %v99_v29 = vld [vmem:[#allocation5 + $0x1c0] sm:$0xff]  ;;  %v66_v32 = vld [vmem:[#allocation5 + $0xb8] sm:$0xff] }
  0x24   :  { %320 = vmatpush3.msra.mxu1 %v87_v15  ;;  %286 = vmatprep.subr.mxu0 %v70_v16  ;;  %v52_v26 = vld [vmem:[#allocation5 + $0x48] sm:$0xff]  ;;  %v51_v30 = vld [vmem:[#allocation5 + $0x40] sm:$0xff]  ;;  %v98_v33 = vld [vmem:[#allocation5 + $0x1b8] sm:$0xff] }
  0x25   :  { %321 = vmatprep.subr.mxu1 %v102_v17  ;;  %287 = vmatpush3.msra.mxu0 %v54_v18  ;;  %v84_v27 = vld [vmem:[#allocation5 + $0x148] sm:$0xff]  ;;  %v83_v31 = vld [vmem:[#allocation5 + $0x140] sm:$0xff]  ;;  %v50_v34 = vld [vmem:[#allocation5 + $0x38] sm:$0xff] }
  0x26   :  { %322 = vmatpush3.msra.mxu1 %v86_v19  ;;  %288 = vmatprep.subr.mxu0 %v69_v20  ;;  %v82_v35 = vld [vmem:[#allocation5 + $0x138] sm:$0xff]  ;;  %v65_v36 = vld [vmem:[#allocation5 + $0xb0] sm:$0xff]  ;;  %v64_v40 = vld [vmem:[#allocation5 + $0xa8] sm:$0xff] }
  0x27   :  { %323 = vmatprep.subr.mxu1 %v101_v21  ;;  %289 = vmatpush3.msra.mxu0 %v53_v22  ;;  %v97_v37 = vld [vmem:[#allocation5 + $0x1b0] sm:$0xff]  ;;  %v96_v41 = vld [vmem:[#allocation5 + $0x1a8] sm:$0xff]  ;;  %v63_v44 = vld [vmem:[#allocation5 + $0xa0] sm:$0xff] }
  0x28   :  { %324 = vmatpush3.msra.mxu1 %v85_v23  ;;  %290 = vmatprep.subr.mxu0 %v68_v24  ;;  %v49_v38 = vld [vmem:[#allocation5 + $0x30] sm:$0xff]  ;;  %v48_v42 = vld [vmem:[#allocation5 + $0x28] sm:$0xff]  ;;  %v95_v45 = vld [vmem:[#allocation5 + $0x1a0] sm:$0xff] }
  0x29   :  { %325 = vmatprep.subr.mxu1 %v100_v25  ;;  %291 = vmatpush3.msra.mxu0 %v52_v26  ;;  %v81_v39 = vld [vmem:[#allocation5 + $0x130] sm:$0xff]  ;;  %v80_v43 = vld [vmem:[#allocation5 + $0x128] sm:$0xff]  ;;  %v47_v46 = vld [vmem:[#allocation5 + $0x20] sm:$0xff] }
  0x2a   :  { %326 = vmatpush3.msra.mxu1 %v84_v27  ;;  %292 = vmatprep.subr.mxu0 %v67_v28  ;;  %v79_v47 = vld [vmem:[#allocation5 + $0x120] sm:$0xff]  ;;  %v62_v48 = vld [vmem:[#allocation5 + $0x98] sm:$0xff]  ;;  %v61_v52 = vld [vmem:[#allocation5 + $0x90] sm:$0xff] }
  0x2b   :  { %327 = vmatprep.subr.mxu1 %v99_v29  ;;  %293 = vmatpush3.msra.mxu0 %v51_v30  ;;  %v94_v49 = vld [vmem:[#allocation5 + $0x198] sm:$0xff]  ;;  %v93_v53 = vld [vmem:[#allocation5 + $0x190] sm:$0xff]  ;;  %v60_v57 = vld [vmem:[#allocation5 + $0x88] sm:$0xff] }
  0x2c   :  { %328 = vmatpush3.msra.mxu1 %v83_v31  ;;  %294 = vmatprep.subr.mxu0 %v66_v32  ;;  %v46_v50 = vld [vmem:[#allocation5 + $0x18] sm:$0xff]  ;;  %v45_v54 = vld [vmem:[#allocation5 + $0x10] sm:$0xff]  ;;  %v92_v58 = vld [vmem:[#allocation5 + $0x188] sm:$0xff] }
  0x2d   :  { %329 = vmatprep.subr.mxu1 %v98_v33  ;;  %295 = vmatpush3.msra.mxu0 %v50_v34  ;;  %v78_v51 = vld [vmem:[#allocation5 + $0x118] sm:$0xff]  ;;  %v77_v55 = vld [vmem:[#allocation5 + $0x110] sm:$0xff]  ;;  %v44_v60 = vld [vmem:[#allocation5 + $0x8] sm:$0xff] }
  0x2e   :  { %330 = vmatpush3.msra.mxu1 %v82_v35  ;;  %296 = vmatprep.subr.mxu0 %v65_v36  ;;  %v41_v56 = vld [vmem:[#allocation2] sm:$0xff]  ;;  %v42_v59 = vld [vmem:[#allocation2 + $0x8] sm:$0xff]  ;;  %v76_v61 = vld [vmem:[#allocation5 + $0x108] sm:$0xff] }
  0x2f   :  { %331 = vmatprep.subr.mxu1 %v97_v37  ;;  %297 = vmatpush3.msra.mxu0 %v49_v38  ;;  %v59_v62 = vld [vmem:[#allocation5 + $0x80] sm:$0xff]  ;;  %v116_v0 = vcombine.high %v41_v56, %v41_v56  ;;  %v117_v2 = vcombine.high %v42_v59, %v42_v59  ;;  %v277_v6 = vld [vmem:[%s460_s2] ss:$0 sm:$0xff] }
  0x30   :  { %332 = vmatpush3.msra.mxu1 %v81_v39  ;;  %298 = vmatprep.subr.mxu0 %v64_v40  ;;  %v91_v63 = vld [vmem:[#allocation5 + $0x180] sm:$0xff] }
  0x31   :  { %333 = vmatprep.subr.mxu1 %v96_v41  ;;  %299 = vmatpush3.msra.mxu0 %v48_v42  ;;  %v43_v1 = vld [vmem:[#allocation5] sm:$0xff] }
  0x32   :  { %334 = vmatpush3.msra.mxu1 %v80_v43  ;;  %300 = vmatprep.subr.mxu0 %v63_v44  ;;  %v75_v3 = vld [vmem:[#allocation5 + $0x100] sm:$0xff] }
  0x33   :  { %335 = vmatprep.subr.mxu1 %v95_v45  ;;  %301 = vmatpush3.msra.mxu0 %v47_v46 }
  0x34   :  { %336 = vmatpush3.msra.mxu1 %v79_v47  ;;  %302 = vmatprep.subr.mxu0 %v62_v48 }
  0x35   :  { %337 = vmatprep.subr.mxu1 %v94_v49  ;;  %303 = vmatpush3.msra.mxu0 %v46_v50 }
  0x36   :  { %338 = vmatpush3.msra.mxu1 %v78_v51  ;;  %304 = vmatprep.subr.mxu0 %v61_v52 }
  0x37   :  { %339 = vmatprep.subr.mxu1 %v93_v53  ;;  %305 = vmatpush3.msra.mxu0 %v45_v54 }
  0x38   :  { %340 = vmatpush3.msra.mxu1 %v77_v55  ;;  %306 = vmatprep.subr.mxu0 %v60_v57 }
  0x39   :  { %341 = vmatprep.subr.mxu1 %v92_v58  ;;  %307 = vmatpush3.msra.mxu0 %v44_v60 }
  0x3a   :  { %342 = vmatpush3.msra.mxu1 %v76_v61  ;;  %308 = vmatprep.subr.mxu0 %v59_v62 }
  0x3b   :  { %343 = vmatprep.subr.mxu1 %v91_v63  ;;  %309 = vmatpush3.msra.mxu0 %v43_v1 }
  0x3c   :  { %184 = vmatprep.mubr.f32.mxu0 %v116_v0  ;;  %344 = vmatpush3.msra.mxu1 %v75_v3 }
  0x3d   :  { %254 = vmatprep.mubr.f32.mxu1 %v117_v2  ;;  %185 = vmatmul.mubr.f32.vlgmr.msra.gmra.mxu0 %v41_v56 }
  0x3e   :  { %255 = vmatmul.mubr.f32.vlgmr.msra.gmra.mxu1 %v42_v59 }
  0xfd   :  { %v310_v4 = vpop.f32.mrf.mxu0 }
  0xfe   :  { %v345_v5 = vpop.f32.mrf.mxu1 }
  0xff   :  { %v311_v7 = vpop.f32.mrf.mxu0 }
 0x100   :  { %v346_v8 = vpop.f32.mrf.mxu1  ;;  %v312_v9 = vadd.f32 %v311_v7, %v310_v4 }
 0x101   :  { %v347_v11 = vadd.f32 %v346_v8, %v345_v5 }
 0x102   :  { %v187_v10 = vadd.f32 %v312_v9, %v277_v6 }
 0x104   :  { %v257_v12 = vadd.f32 %v347_v11, %v187_v10 }
 0x106   :  { %260 = vst [vmem:[#allocation7] sm:$0xf] %v257_v12 }
 0x107   :  { %406 = shalt.err (!%p403_p0)
}
 0x108   :  { %270 = dma.vmem_to_hbm [thread:$0]  %s268_s25, 64, %s461_s3, [#allocation4]  }
 0x109   :  { %419 = dma.done.wait [#allocation4], 64  }
 0x10a   :  { %420 = vsyncadd [#allocation4], 4294967232 }
 0x10b   :  { %274 = vsyncpa [#allocation3], 1 }
 0x10c   :  { %275 = vsyncpa [#allocation6], 1 }
 0x10d   :  { %276 = vsyncpa [#allocation4], 1 }

</bundles_post_ra>
